<compile_context>
chip_gen: v5e
topology: v5e:2x2
jax: 0.10.0
libtpu: 0.0.40
codegen_flags: <defaults>
</compile_context>

<pallas_src>
import functools

import jax
import jax.numpy as jnp
from jax.experimental import pallas as pl
from jax.experimental.pallas import tpu as pltpu

_LANES = 512          # lane-dense last dim (multiple of 128)
_MAX_BLOCK_ROWS = 512  # rows per tile -> 512*512*4B = 1 MiB/buffer (f32)


def _dropout_kernel(seed_ref, x_ref, o_ref, *, threshold, scale, block_rows, lanes):
    i = pl.program_id(0)
    shape = x_ref.shape  # (block_rows_or_full, lanes)

    # Global linear element index of every element in this tile.
    row = jax.lax.broadcasted_iota(jnp.int32, shape, 0) + i * block_rows
    col = jax.lax.broadcasted_iota(jnp.int32, shape, 1)
    gidx = (row * lanes + col).astype(jnp.uint32)

    # Counter-based hash PRNG: mix (gidx + seed), then murmur3 fmix32.
    seed = seed_ref[0].astype(jnp.uint32)
    h = (gidx + seed) * jnp.uint32(0x9E3779B1)
    h = h ^ (h >> 16)
    h = h * jnp.uint32(0x85EBCA6B)
    h = h ^ (h >> 13)
    h = h * jnp.uint32(0xC2B2AE35)
    h = h ^ (h >> 16)

    # Bernoulli(keep_prob) via exact integer threshold compare.
    keep = h < jnp.uint32(threshold)

    x = x_ref[...]
    o_ref[...] = jnp.where(keep, x * scale, 0.0).astype(o_ref.dtype)


def dropout(x, p=0.5, *, seed=0, training=True):
    """Pallas dropout matching torch: x * bernoulli(1-p) / (1-p) in training."""
    if not training or p == 0.0:
        return x

    orig_shape = x.shape
    total = x.size
    keep_prob = 1.0 - float(p)
    threshold = min(int(round(keep_prob * (1 << 32))), (1 << 32) - 1)
    scale = 1.0 / keep_prob

    # Flatten fully and re-tile lane-dense: [m_pad, _LANES].
    m = -(-total // _LANES)
    block_rows = min(m, _MAX_BLOCK_ROWS)
    m_pad = -(-m // block_rows) * block_rows
    pad = m_pad * _LANES - total

    flat = x.reshape(-1)
    if pad:
        flat = jnp.pad(flat, (0, pad))
    x2d = flat.reshape(m_pad, _LANES)

    grid = (m_pad // block_rows,)
    seed_arr = jnp.array([seed], dtype=jnp.int32)

    kernel = functools.partial(
        _dropout_kernel,
        threshold=threshold,
        scale=scale,
        block_rows=block_rows,
        lanes=_LANES,
    )

    out2d = pl.pallas_call(
        kernel,
        out_shape=jax.ShapeDtypeStruct(x2d.shape, x2d.dtype),
        grid=grid,
        in_specs=[
            pl.BlockSpec(memory_space=pltpu.SMEM),               # scalar seed
            pl.BlockSpec((block_rows, _LANES), lambda i: (i, 0)),  # x tile
        ],
        out_specs=pl.BlockSpec((block_rows, _LANES), lambda i: (i, 0)),
        compiler_params=pltpu.CompilerParams(
            dimension_semantics=("parallel",),  # shard tiles across TCs (v7x)
        ),
    )(seed_arr, x2d)

    return out2d.reshape(-1)[:total].reshape(orig_shape)


if __name__ == "__main__":
    key = jax.random.PRNGKey(0)
    x = jax.random.normal(key, (2, 4, 16, 16), dtype=jnp.float32)

    p = 0.5
    y = dropout(x, p=p, seed=1234, training=True)
    y = jax.block_until_ready(y)

    # Sanity checks: shape/dtype preserved; surviving elements are exactly
    # x / (1 - p); dropped elements are exactly 0.
    assert y.shape == x.shape and y.dtype == x.dtype
    kept = y != 0.0
    assert jnp.allclose(y[kept], x[kept] / (1.0 - p), rtol=1e-6, atol=1e-6)
    frac_kept = jnp.mean(kept.astype(jnp.float32))
    assert 0.3 < float(frac_kept) < 0.7  # Bernoulli(0.5) on 2048 elems

    # eval-mode / p=0 pass-through
    y_eval = jax.block_until_ready(dropout(x, p=p, training=False))
    assert jnp.array_equal(y_eval, x)
    y_p0 = jax.block_until_ready(dropout(x, p=0.0, training=True))
    assert jnp.array_equal(y_p0, x)

    print("KERNEL_OK")
</pallas_src>

<mosaic_0001>
module attributes {stable_mosaic.version = 11 : i64} {
  func.func @_dropout_kernel(%arg0: i32, %arg1: memref<1xi32, #tpu.memory_space<smem>>, %arg2: memref<4x512xf32, #tpu.memory_space<vmem>>, %arg3: memref<4x512xf32, #tpu.memory_space<vmem>>) attributes {dimension_semantics = [#tpu.dimension_semantics<parallel>], iteration_bounds = array<i64: 1>, scalar_prefetch = 0 : i64, scratch_operands = 0 : i64, tpu.core_type = #tpu.core_type<tc>, window_params = [{transform_indices = @transform_0, window_bounds = array<i64: 1>}, {transform_indices = @transform_1, window_bounds = array<i64: 4, 512>}, {transform_indices = @transform_2, window_bounds = array<i64: 4, 512>}]} {
    %0 = tpu.iota {dimensions = array<i32: 0>} : vector<4x512xi32>
    %c4_i32 = arith.constant 4 : i32
    %1 = arith.muli %arg0, %c4_i32 : i32
    %2 = vector.broadcast %1 : i32 to vector<4x512xi32>
    %3 = arith.addi %0, %2 : vector<4x512xi32>
    %4 = tpu.iota {dimensions = array<i32: 1>} : vector<4x512xi32>
    %c512_i32 = arith.constant 512 : i32
    %5 = vector.broadcast %c512_i32 : i32 to vector<4x512xi32>
    %6 = arith.muli %3, %5 : vector<4x512xi32>
    %7 = arith.addi %6, %4 : vector<4x512xi32>
    %c0 = arith.constant 0 : index
    %8 = memref.load %arg1[%c0] : memref<1xi32, #tpu.memory_space<smem>>
    %9 = vector.broadcast %8 : i32 to vector<4x512xi32>
    %10 = arith.addi %7, %9 : vector<4x512xi32>
    %c-1640531535_i32 = arith.constant -1640531535 : i32
    %11 = vector.broadcast %c-1640531535_i32 : i32 to vector<4x512xi32>
    %12 = arith.muli %10, %11 : vector<4x512xi32>
    %c16_i32 = arith.constant 16 : i32
    %13 = vector.broadcast %c16_i32 : i32 to vector<4x512xi32>
    %14 = arith.shrui %12, %13 : vector<4x512xi32>
    %15 = arith.xori %12, %14 : vector<4x512xi32>
    %c-2048144789_i32 = arith.constant -2048144789 : i32
    %16 = vector.broadcast %c-2048144789_i32 : i32 to vector<4x512xi32>
    %17 = arith.muli %15, %16 : vector<4x512xi32>
    %c13_i32 = arith.constant 13 : i32
    %18 = vector.broadcast %c13_i32 : i32 to vector<4x512xi32>
    %19 = arith.shrui %17, %18 : vector<4x512xi32>
    %20 = arith.xori %17, %19 : vector<4x512xi32>
    %c-1028477387_i32 = arith.constant -1028477387 : i32
    %21 = vector.broadcast %c-1028477387_i32 : i32 to vector<4x512xi32>
    %22 = arith.muli %20, %21 : vector<4x512xi32>
    %c16_i32_0 = arith.constant 16 : i32
    %23 = vector.broadcast %c16_i32_0 : i32 to vector<4x512xi32>
    %24 = arith.shrui %22, %23 : vector<4x512xi32>
    %25 = arith.xori %22, %24 : vector<4x512xi32>
    %c-2147483648_i32 = arith.constant -2147483648 : i32
    %26 = vector.broadcast %c-2147483648_i32 : i32 to vector<4x512xi32>
    %27 = arith.cmpi ult, %25, %26 : vector<4x512xi32>
    %c0_1 = arith.constant 0 : index
    %c0_2 = arith.constant 0 : index
    %28 = vector.load %arg2[%c0_1, %c0_2] : memref<4x512xf32, #tpu.memory_space<vmem>>, vector<4x512xf32>
    %cst = arith.constant 2.000000e+00 : f32
    %29 = vector.broadcast %cst : f32 to vector<4x512xf32>
    %30 = arith.mulf %28, %29 : vector<4x512xf32>
    %cst_3 = arith.constant 0.000000e+00 : f32
    %31 = vector.broadcast %cst_3 : f32 to vector<4x512xf32>
    %32 = arith.select %27, %30, %31 : vector<4x512xi1>, vector<4x512xf32>
    %c0_4 = arith.constant 0 : index
    %c0_5 = arith.constant 0 : index
    %33 = vector.load %arg3[%c0_4, %c0_5] : memref<4x512xf32, #tpu.memory_space<vmem>>, vector<4x512xf32>
    tpu.vector_store %arg3[%c0_4, %c0_5], %32 {strides = array<i32>} : memref<4x512xf32, #tpu.memory_space<vmem>>, vector<4x512xf32>,
    return
  }
  func.func @transform_0(%arg0: i32) -> i32 {
    %c0_i32 = arith.constant 0 : i32
    %c0_i32_0 = arith.constant 0 : i32
    return %c0_i32 : i32
  }
  func.func @transform_1(%arg0: i32) -> (i32, i32) {
    %c0_i32 = arith.constant 0 : i32
    %c0_i32_0 = arith.constant 0 : i32
    return %arg0, %c0_i32 : i32, i32
  }
  func.func @transform_2(%arg0: i32) -> (i32, i32) {
    %c0_i32 = arith.constant 0 : i32
    %c0_i32_0 = arith.constant 0 : i32
    return %arg0, %c0_i32 : i32, i32
  }
}

</mosaic_0001>

<bundles_post_ra>
// kernel: tpu_custom_call.1
= control target key start
LH: loop header
LB: loop body
LE: loop exit
PB: predicated region body
PF: predicated region fallthrough
CT: control target
= control target key end

     0   :  { %8 = vsyncpa [#allocation4], 0  ;;  %s239_s0 = inlined_call_operand.<no memory space> [shape: s32[1], index: 0, kind: input, shape index: {}]   ;;  %s240_s1 = inlined_call_operand.hbm [shape: f32[4,512], index: 1, kind: input, shape index: {}]   ;;  %s241_s2 = inlined_call_operand.hbm [shape: f32[4,512], index: 2, kind: output, shape index: {}]  }
   0x1   :  { %9 = vsyncpa [#allocation5], 0  ;;  %s17_s11 = sshll.u32 %s240_s1, 4  ;;  %s205_s12 = smov [#allocation3]   ;;  %s18_s11 = int_to_ptr.hbm [resolvable:$true] %s17_s11 }
   0x2   :  { %s19_s13 = sshll.u32 %s205_s12, 4  ;;  %s20_s13 = int_to_ptr.vmem [resolvable:$true] %s19_s13 }
   0x3   :  { %22 = dma.hbm_to_vmem [thread:$0]  %s18_s11, 256, %s20_s13, [#allocation4]  }
   0x4   :  { %201 = dma.done.wait [#allocation4], 256  }
   0x5   :  { %202 = vsyncadd [#allocation4], 4294967040  ;;  %v27_v0 = vlaneseq  ;;  %v43_v7 = vstv %s239_s0  ;;  %v96_v12 = vld [vmem:[#allocation3] sm:$0xff]  ;;  %v97_v13 = vld [vmem:[#allocation3 + $0x8] sm:$0xff]  ;;  %vm123_vm2 = vcmask 1043456   ;;  %s206_s0 = smov [#allocation6]  }
   0x6   :  { %v98_v14 = vmul.f32 2.0, %v96_v12  ;;  %v99_v15 = vmul.f32 2.0, %v97_v13  ;;  %s135_s1 = sshll.u32 %s206_s0, 4  ;;  %s137_s18 = sshll.u32 %s241_s2, 4  ;;  %s136_s1 = int_to_ptr.vmem [resolvable:$true] %s135_s1  ;;  %s138_s18 = int_to_ptr.hbm [resolvable:$true] %s137_s18 }
   0x7   :  { %v28_v1 = vshrl.u32 %v27_v0, 7  ;;  %v33_v2 = vand.u32 127, %v27_v0 }
   0x8   :  { %102 = vst [vmem:[#allocation1] ss:$2 sm:$0xff] %v98_v14 }
   0x9   :  { %v34_v3 = vadd.s32 128, %v33_v2  ;;  %v37_v4 = vmul.u32 512, %v28_v1  ;;  %v35_v5 = vadd.s32 256, %v33_v2  ;;  %v36_v6 = vadd.s32 384, %v33_v2  ;;  %104 = vst [vmem:[#allocation1 + $0x10] ss:$2 sm:$0xff] %v99_v15 }
   0xb   :  { %v38_v8 = vadd.s32 %v37_v4, %v33_v2  ;;  %v39_v9 = vadd.s32 %v37_v4, %v34_v3  ;;  %v40_v10 = vadd.s32 %v37_v4, %v35_v5  ;;  %v41_v11 = vadd.s32 %v37_v4, %v36_v6 }
   0xd   :  { %v44_v16 = vadd.s32 %v43_v7, %v38_v8  ;;  %v45_v17 = vadd.s32 %v43_v7, %v39_v9  ;;  %v46_v18 = vadd.s32 %v43_v7, %v40_v10  ;;  %v47_v19 = vadd.s32 %v43_v7, %v41_v11 }
   0xf   :  { %v48_v20 = vmul.u32 2654435761, %v44_v16  ;;  %v49_v21 = vmul.u32 2654435761, %v45_v17  ;;  %v50_v22 = vmul.u32 2654435761, %v46_v18 }
  0x10   :  { %v51_v23 = vmul.u32 2654435761, %v47_v19  ;;  %v106_v56 = vld.sshfl [vmem:[#allocation1 + $0x8] sm:$0xff pattern:$0x75316420] }
  0x11   :  { %v52_v24 = vshrl.u32 %v48_v20, 16  ;;  %v53_v25 = vshrl.u32 %v49_v21, 16  ;;  %v54_v26 = vshrl.u32 %v50_v22, 16  ;;  %v105_v59 = vld.sshfl [vmem:[#allocation1] sm:$0xff pattern:$0x75316420] }
  0x12   :  { %v55_v27 = vshrl.u32 %v51_v23, 16  ;;  %v108_v60 = vld.sshfl [vmem:[#allocation1 + $0x18] sm:$0xff pattern:$0x75316420] }
  0x13   :  { %v56_v28 = vxor.u32 %v52_v24, %v48_v20  ;;  %v57_v29 = vxor.u32 %v53_v25, %v49_v21  ;;  %v58_v30 = vxor.u32 %v54_v26, %v50_v22  ;;  %v107_v2 = vld.sshfl [vmem:[#allocation1 + $0x10] sm:$0xff pattern:$0x75316420] }
  0x14   :  { %v59_v31 = vxor.u32 %v55_v27, %v51_v23 }
  0x15   :  { %v60_v32 = vmul.u32 2246822507, %v56_v28  ;;  %v61_v33 = vmul.u32 2246822507, %v57_v29  ;;  %v62_v36 = vmul.u32 2246822507, %v58_v30 }
  0x16   :  { %v63_v37 = vmul.u32 2246822507, %v59_v31 }
  0x17   :  { %v64_v34 = vshrl.u32 %v60_v32, 13  ;;  %v65_v35 = vshrl.u32 %v61_v33, 13  ;;  %v66_v40 = vshrl.u32 %v62_v36, 13 }
  0x18   :  { %v67_v41 = vshrl.u32 %v63_v37, 13 }
  0x19   :  { %v68_v38 = vxor.u32 %v64_v34, %v60_v32  ;;  %v69_v39 = vxor.u32 %v65_v35, %v61_v33  ;;  %v70_v44 = vxor.u32 %v66_v40, %v62_v36 }
  0x1a   :  { %v71_v45 = vxor.u32 %v67_v41, %v63_v37 }
  0x1b   :  { %v72_v42 = vmul.u32 3266489909, %v68_v38  ;;  %v73_v43 = vmul.u32 3266489909, %v69_v39  ;;  %v74_v48 = vmul.u32 3266489909, %v70_v44 }
  0x1c   :  { %v75_v49 = vmul.u32 3266489909, %v71_v45 }
  0x1d   :  { %v76_v46 = vshrl.u32 %v72_v42, 16  ;;  %v77_v47 = vshrl.u32 %v73_v43, 16  ;;  %v78_v52 = vshrl.u32 %v74_v48, 16 }
  0x1e   :  { %v79_v53 = vshrl.u32 %v75_v49, 16 }
  0x1f   :  { %v80_v50 = vxor.u32 %v76_v46, %v72_v42  ;;  %v81_v51 = vxor.u32 %v77_v47, %v73_v43  ;;  %v82_v57 = vxor.u32 %v78_v52, %v74_v48 }
  0x20   :  { %v83_v58 = vxor.u32 %v79_v53, %v75_v49 }
  0x21   :  { %v147_v54 = vxor.u32 2147483648, %v80_v50  ;;  %v148_v55 = vxor.u32 2147483648, %v81_v51  ;;  %v149_v62 = vxor.u32 2147483648, %v82_v57 }
  0x22   :  { %v150_v63 = vxor.u32 2147483648, %v83_v58 }
  0x23   :  { %vm228_vm0 = vcmp.lt.s32.totalorder %v147_v54, 0  ;;  %vm89_vm1 = vcmp.lt.s32.totalorder %v148_v55, 0  ;;  %vm92_vm3 = vcmp.lt.s32.totalorder %v149_v62, 0 }
  0x24   :  { %v114_v0 = vsel %vm89_vm1, %v106_v56, 0.0  ;;  %vm95_vm4 = vcmp.lt.s32.totalorder %v150_v63, 0  ;;  %v113_v3 = vsel %vm228_vm0, %v105_v59, 0.0  ;;  %v115_v7 = vsel %vm92_vm3, %v107_v2, 0.0 }
  0x25   :  { %v121_v1 = vrot.slane %v114_v0, 4  ;;  %v116_v4 = vsel %vm95_vm4, %v108_v60, 0.0 }
  0x26   :  { %v122_v6 = vrot.slane %v116_v4, 4 }
  0x27   :  { %v124_v5 = vsel %vm123_vm2, %v113_v3, %v121_v1 }
  0x28   :  { %128 = vst [vmem:[#allocation6] sm:$0xff] %v124_v5  ;;  %v125_v8 = vsel %vm123_vm2, %v115_v7, %v122_v6 }
  0x29   :  { %129 = vst [vmem:[#allocation6 + $0x8] sm:$0xff] %v125_v8 }
  0x2a   :  { %140 = dma.vmem_to_hbm [thread:$0]  %s136_s1, 256, %s138_s18, [#allocation5]  }
  0x2b   :  { %203 = dma.done.wait [#allocation5], 256  }
  0x2c   :  { %204 = vsyncadd [#allocation5], 4294967040 }
  0x2d   :  { %145 = vsyncpa [#allocation4], 1 }
  0x2e   :  { %146 = vsyncpa [#allocation5], 1 }

</bundles_post_ra>
